<compile_context>
chip_gen: v7x
topology: tpu7x:2x2x1
jax: 0.10.0
libtpu: 0.0.40
codegen_flags: <defaults>
</compile_context>

<pallas_src>
import jax
import jax.numpy as jnp
from jax.experimental import pallas as pl
from jax.experimental.pallas import tpu as pltpu


def _linear_kernel(x_ref, w_ref, b_ref, o_ref):
    # x_ref: (tm, d_model)   w_ref: (d_model, tn)   b_ref: (1, tn)   o_ref: (tm, tn)
    acc = jnp.dot(x_ref[...], w_ref[...], preferred_element_type=jnp.float32)
    acc = acc + b_ref[...].astype(jnp.float32)   # bias broadcast over the tm rows
    o_ref[...] = acc.astype(o_ref.dtype)


def _linear_pallas(x2d, weight, bias, *, out_dtype, tm=512, tn=512):
    """out[m, n] = x2d[m, k] @ weight[k, n] + bias[n], tiled (N-outer, M-inner)."""
    m, d_model = x2d.shape
    d_model_w, n_out = weight.shape
    assert d_model_w == d_model

    if bias is None:
        bias = jnp.zeros((n_out,), jnp.float32)
    bias2d = bias.reshape(1, n_out).astype(jnp.float32)

    # Tile selection: use the full extent when it fits (always legal), otherwise a
    # hardware-aligned tile (multiple of 8 sublanes / 128 lanes); the last partial
    # block is masked by Pallas, so no wrapper-side padding is needed.
    tm_eff = m if m <= tm else max((tm // 8) * 8, 8)
    tn_eff = n_out if n_out <= tn else max((tn // 128) * 128, 128)

    nt = pl.cdiv(n_out, tn_eff)
    mt = pl.cdiv(m, tm_eff)

    xb = jnp.dtype(x2d.dtype).itemsize
    wb = jnp.dtype(weight.dtype).itemsize
    ob = jnp.dtype(out_dtype).itemsize

    cost = pl.CostEstimate(
        flops=2 * m * d_model * n_out,
        transcendentals=0,
        bytes_accessed=(nt * m * d_model * xb        # x streamed once per N tile
                        + d_model * n_out * wb       # weight streamed once (resident across M sweep)
                        + n_out * 4                  # bias
                        + m * n_out * ob),           # output write
    )

    # Double-buffered x / weight / bias / out tiles + f32 accumulator + slack,
    # clamped to [32 MiB, 64 MiB] (64 MiB = v7x physical per-TC VMEM).
    vmem_need = (2 * tm_eff * d_model * xb
                 + 2 * d_model * tn_eff * wb
                 + 2 * tn_eff * 4
                 + 2 * tm_eff * tn_eff * ob
                 + tm_eff * tn_eff * 4)
    vmem_limit = min(max(int(vmem_need * 1.25) + (2 << 20), 32 << 20), 64 << 20)

    return pl.pallas_call(
        _linear_kernel,
        out_shape=jax.ShapeDtypeStruct((m, n_out), out_dtype),
        # N outer, M inner (fastest): the weight block index is constant across the M
        # sweep, so it stays VMEM-resident and is DMA'd from HBM exactly once.
        grid=(nt, mt),
        in_specs=[
            pl.BlockSpec((tm_eff, d_model), lambda j, i: (i, 0)),   # x row tile
            pl.BlockSpec((d_model, tn_eff), lambda j, i: (0, j)),   # weight column tile
            pl.BlockSpec((1, tn_eff), lambda j, i: (0, j)),         # bias tile
        ],
        out_specs=pl.BlockSpec((tm_eff, tn_eff), lambda j, i: (i, j)),
        compiler_params=pltpu.CompilerParams(
            dimension_semantics=("parallel", "parallel"),  # megacore sharding on v7x
            vmem_limit_bytes=vmem_limit,
        ),
        cost_estimate=cost,
    )(x2d, weight, bias2d)


def prepare_for_multi_head_attention(x, weight, bias, heads, d_k, *,
                                     compute_dtype=jnp.bfloat16,
                                     out_dtype=None, tm=512, tn=512):
    """
    x:      [seq_len, batch, d_model]
    weight: [d_model, heads*d_k]   (already transposed vs. PyTorch's (out, in))
    bias:   [heads*d_k] or None (module's bias=False)
    returns [seq_len, batch, heads, d_k] in `out_dtype`

    compute_dtype: bf16 by default (MXU-peak, half weight HBM stream); f32 accumulation
                   is kept via preferred_element_type. Pass None for bit-accurate f32.
                   Store parameters directly in compute_dtype to avoid the per-call cast.
    out_dtype:     defaults to compute_dtype (downstream attention is usually bf16).
    """
    seq_len, batch, d_model = x.shape
    n_out = heads * d_k
    assert weight.shape == (d_model, n_out)

    if out_dtype is None:
        out_dtype = compute_dtype if compute_dtype is not None else x.dtype

    x2d = x.reshape(seq_len * batch, d_model)
    if compute_dtype is not None:
        x2d = x2d.astype(compute_dtype)
        if weight.dtype != compute_dtype:
            # NOTE: keep stored weights in compute_dtype so this cast happens once offline.
            weight = weight.astype(compute_dtype)

    out2d = _linear_pallas(x2d, weight, bias, out_dtype=out_dtype, tm=tm, tn=tn)
    return out2d.reshape(seq_len, batch, heads, d_k)


def prepare_qkv(x, wq, wk, wv, bq, bk, bv, heads, d_k, **kw):
    """Fused Q/K/V projections: one pallas_call with N = 3*heads*d_k, so x is read
    from HBM once for all three projections (3x activation-bandwidth amortization).
    In production, store the concatenated weight/bias so the concat below is offline."""
    seq_len, batch, _ = x.shape
    w = jnp.concatenate([wq, wk, wv], axis=1)
    b = jnp.concatenate([bq, bk, bv]) if bq is not None else None
    out = prepare_for_multi_head_attention(x, w, b, 3 * heads, d_k, **kw)
    out = out.reshape(seq_len, batch, 3, heads, d_k)
    return out[:, :, 0], out[:, :, 1], out[:, :, 2]


if __name__ == "__main__":
    # Small shapes consistent with the module: seq=8, batch=2, d_model=32, heads=4, d_k=16
    seq_len, batch, d_model = 8, 2, 32
    heads, d_k = 4, 16
    n_out = heads * d_k

    key = jax.random.PRNGKey(0)
    kx, kw, kb = jax.random.split(key, 3)

    x = jax.random.normal(kx, (seq_len, batch, d_model), dtype=jnp.float32)
    bound = 1.0 / (d_model ** 0.5)   # Kaiming-uniform-like scale, as in nn.Linear
    weight = jax.random.uniform(kw, (d_model, n_out), jnp.float32, -bound, bound)
    bias = jax.random.uniform(kb, (n_out,), jnp.float32, -bound, bound)

    ref = (x.reshape(-1, d_model) @ weight + bias).reshape(seq_len, batch, heads, d_k)

    # 1) Default fast path: bf16 operands, f32 accumulation, bf16 output.
    out_bf16 = prepare_for_multi_head_attention(x, weight, bias, heads, d_k)
    out_bf16 = jax.block_until_ready(out_bf16)
    assert out_bf16.shape == (seq_len, batch, heads, d_k)
    assert out_bf16.dtype == jnp.bfloat16
    assert jnp.allclose(out_bf16.astype(jnp.float32), ref, atol=5e-2, rtol=5e-2)

    # 2) Opt-in bit-accuracy path: f32 operands and f32 output.
    out_f32 = prepare_for_multi_head_attention(x, weight, bias, heads, d_k,
                                               compute_dtype=None)
    out_f32 = jax.block_until_ready(out_f32)
    assert out_f32.dtype == jnp.float32
    assert jnp.allclose(out_f32, ref, atol=1e-5, rtol=1e-5)

    # 3) Fused Q/K/V (single pallas_call, 3x wider N), f32 path for an exact check.
    q, k, v = prepare_qkv(x, weight, weight, weight, bias, bias, bias, heads, d_k,
                          compute_dtype=None)
    q = jax.block_until_ready(q)
    assert q.shape == (seq_len, batch, heads, d_k)
    assert jnp.allclose(q, ref, atol=1e-5, rtol=1e-5)
    assert jnp.allclose(k, ref, atol=1e-5, rtol=1e-5)
    assert jnp.allclose(v, ref, atol=1e-5, rtol=1e-5)

    print("KERNEL_OK")
</pallas_src>

<mosaic_0001>
module attributes {stable_mosaic.version = 11 : i64} {
  func.func @_linear_kernel(%arg0: i32, %arg1: i32, %arg2: memref<16x32xbf16, #tpu.memory_space<vmem>>, %arg3: memref<32x64xbf16, #tpu.memory_space<vmem>>, %arg4: memref<1x64xf32, #tpu.memory_space<vmem>>, %arg5: memref<16x64xbf16, #tpu.memory_space<vmem>>) attributes {dimension_semantics = [#tpu.dimension_semantics<parallel>, #tpu.dimension_semantics<parallel>], iteration_bounds = array<i64: 1, 1>, scalar_prefetch = 0 : i64, scratch_operands = 0 : i64, tpu.core_type = #tpu.core_type<tc>, window_params = [{transform_indices = @transform_0, window_bounds = array<i64: 16, 32>}, {transform_indices = @transform_1, window_bounds = array<i64: 32, 64>}, {transform_indices = @transform_2, window_bounds = array<i64: 1, 64>}, {transform_indices = @transform_3, window_bounds = array<i64: 16, 64>}]} {
    %c0 = arith.constant 0 : index
    %c0_0 = arith.constant 0 : index
    %0 = vector.load %arg2[%c0, %c0_0] : memref<16x32xbf16, #tpu.memory_space<vmem>>, vector<16x32xbf16>
    %c0_1 = arith.constant 0 : index
    %c0_2 = arith.constant 0 : index
    %1 = vector.load %arg3[%c0_1, %c0_2] : memref<32x64xbf16, #tpu.memory_space<vmem>>, vector<32x64xbf16>
    %cst = arith.constant dense<0.000000e+00> : vector<16x64xf32>
    %2 = tpu.matmul %0, %1, %cst {dimension_numbers = #tpu.dot_dimension_numbers<[1], [0], [0], [1], [0, 0, 1, 1], [], []>} : vector<16x32xbf16>, vector<32x64xbf16>, vector<16x64xf32> -> vector<16x64xf32>
    %c0_3 = arith.constant 0 : index
    %c0_4 = arith.constant 0 : index
    %3 = vector.load %arg4[%c0_3, %c0_4] : memref<1x64xf32, #tpu.memory_space<vmem>>, vector<1x64xf32>
    %4 = vector.broadcast %3 : vector<1x64xf32> to vector<16x64xf32>
    %5 = arith.addf %2, %4 : vector<16x64xf32>
    %6 = arith.truncf %5 : vector<16x64xf32> to vector<16x64xbf16>
    %c0_5 = arith.constant 0 : index
    %c0_6 = arith.constant 0 : index
    %7 = vector.load %arg5[%c0_5, %c0_6] : memref<16x64xbf16, #tpu.memory_space<vmem>>, vector<16x64xbf16>
    tpu.vector_store %arg5[%c0_5, %c0_6], %6 {strides = array<i32>} : memref<16x64xbf16, #tpu.memory_space<vmem>>, vector<16x64xbf16>,
    return
  }
  func.func @transform_0(%arg0: i32, %arg1: i32) -> (i32, i32) {
    %c0_i32 = arith.constant 0 : i32
    %c0_i32_0 = arith.constant 0 : i32
    return %arg1, %c0_i32 : i32, i32
  }
  func.func @transform_1(%arg0: i32, %arg1: i32) -> (i32, i32) {
    %c0_i32 = arith.constant 0 : i32
    %c0_i32_0 = arith.constant 0 : i32
    return %c0_i32, %arg0 : i32, i32
  }
  func.func @transform_2(%arg0: i32, %arg1: i32) -> (i32, i32) {
    %c0_i32 = arith.constant 0 : i32
    %c0_i32_0 = arith.constant 0 : i32
    return %c0_i32, %arg0 : i32, i32
  }
  func.func @transform_3(%arg0: i32, %arg1: i32) -> (i32, i32) {
    %c0_i32 = arith.constant 0 : i32
    return %arg1, %arg0 : i32, i32
  }
}

</mosaic_0001>

<bundles_post_ra>
// kernel: tpu_custom_call.1
= control target key start
LH: loop header
LB: loop body
LE: loop exit
PB: predicated region body
PF: predicated region fallthrough
CT: control target
= control target key end

     0   :  { %8 = vsyncpa [#allocation3], 0  ;;  %s325_s0 = inlined_call_operand.hbm [shape: bf16[16,32], index: 0, kind: input, shape index: {}]   ;;  %s326_s1 = inlined_call_operand.hbm [shape: bf16[32,64], index: 1, kind: input, shape index: {}]   ;;  %s327_s2 = inlined_call_operand.vmem [shape: f32[1,64], index: 2, kind: input, shape index: {}]   ;;  %s328_s3 = inlined_call_operand.hbm [shape: bf16[16,64], index: 3, kind: output, shape index: {}]  }
   0x1   :  { %9 = vsyncpa [#allocation6], 0 }
   0x2   :  { %10 = vsyncpa [#allocation4], 0  ;;  %s250_s12 = smov [#allocation2]   ;;  %s178_s16 = scalar_lea.hbm %s325_s0, 128 }
   0x3   :  { %s16_s13 = sshll.u32 %s250_s12, 4  ;;  %p179_p0 = scmp.ne.s32.totalorder %s325_s0, %s178_s16  ;;  %s17_s13 = int_to_ptr.vmem [resolvable:$true] %s16_s13 }
   0x4   :  { %p182_p1 = scmp.lt.u32.totalorder %s178_s16, %s325_s0 }
   0x6   :  { %p184_p2 = pnand %p182_p1, %p179_p0 }
   0x8   :  { %187 = shalt.err (!%p184_p2)
}
   0x9   :  { %s188_s21 = scalar_lea.vmem %s17_s13, 128  ;;  %p193_p4 = scmp.lt.s32.totalorder %s17_s13, %s17_s13 }
   0xa   :  { %p189_p3 = scmp.ne.s32.totalorder %s17_s13, %s188_s21  ;;  %p194_p5 = scmp.lt.s32.totalorder %s188_s21, %s188_s21 }
   0xc   :  { %p195_p6 = por %p194_p5, %p193_p4 }
   0xe   :  { %p196_p7 = pnand %p195_p6, %p189_p3 }
  0x10   :  { %199 = shalt.err (!%p196_p7)
}
  0x11   :  { %s251_s22 = smov 64   ;;  %s252_s23 = smov 4  }
  0x12   :  { %22 = dma.hbm_to_vmem [thread:$0]  %s325_s0, 128, %s17_s13, [#allocation3], %s251_s22, %s251_s22, %s252_s23  }
  0x13   :  { %s253_s26 = smov [#allocation5]   ;;  %s200_s30 = scalar_lea.hbm %s326_s1, 256 }
  0x14   :  { %s28_s27 = sshll.u32 %s253_s26, 4  ;;  %p201_p8 = scmp.ne.s32.totalorder %s326_s1, %s200_s30  ;;  %s29_s27 = int_to_ptr.vmem [resolvable:$true] %s28_s27 }
  0x15   :  { %p204_p9 = scmp.lt.u32.totalorder %s200_s30, %s326_s1 }
  0x17   :  { %p206_p10 = pnand %p204_p9, %p201_p8 }
  0x19   :  { %209 = shalt.err (!%p206_p10)
}
  0x1a   :  { %s210_s8 = scalar_lea.vmem %s29_s27, 256  ;;  %p215_p12 = scmp.lt.s32.totalorder %s29_s27, %s29_s27 }
  0x1b   :  { %p211_p11 = scmp.ne.s32.totalorder %s29_s27, %s210_s8  ;;  %p216_p13 = scmp.lt.s32.totalorder %s210_s8, %s210_s8 }
  0x1d   :  { %p217_p0 = por %p216_p13, %p215_p12 }
  0x1f   :  { %p218_p1 = pnand %p217_p0, %p211_p11 }
  0x21   :  { %221 = shalt.err (!%p218_p1)
}
  0x22   :  { %34 = dma.hbm_to_vmem [thread:$0]  %s326_s1, 256, %s29_s27, [#allocation6], %s251_s22, %s251_s22, %s252_s23  }
  0x23   :  { %244 = dma.done.wait [#allocation3], 128  }
  0x24   :  { %245 = vsyncadd [#allocation3], 4294967168 }
  0x25   :  { %246 = dma.done.wait [#allocation6], 256  }
  0x26   :  { %247 = vsyncadd [#allocation6], 4294967040  ;;  %v254_v0 = vmov 0.0   ;;  %vm255_vm0 = vmmov 0   ;;  %v175_v1 = vld [vmem:[#allocation5] sm:$0xff]   ;;  %v176_v2 = vld [vmem:[#allocation5 + $0x8] sm:$0xff]  }
  0x27   :  { %160 = vmatprep.subr.bf16.mxu0 %v254_v0  ;;  %164 = vmatprep.mubr.msk.bf16.mxu0 %vm255_vm0, %v254_v0  ;;  %v177_v3 = vld [vmem:[#allocation2] sm:$0xff]   ;;  %vm74_vm1 = vcmask 261120   ;;  %vm127_vm2 = vcmask 519168   ;;  %s256_s1 = smov [#allocation7]  }
  0x28   :  { %161 = vmatpush3.bf16.msra.mxu0 %v175_v1  ;;  %v148_v4 = vld [vmem:[%s327_s2] ss:$0 sm:$0xff]  ;;  %s135_s12 = sshll.u32 %s256_s1, 4  ;;  %s136_s12 = int_to_ptr.vmem [resolvable:$true] %s135_s12 }
  0x29   :  { %162 = vmatprep.subr.bf16.mxu0 %v254_v0  ;;  %s222_s13 = scalar_lea.vmem %s136_s12, 128  ;;  %p227_p3 = scmp.lt.s32.totalorder %s136_s12, %s136_s12 }
  0x2a   :  { %p223_p2 = scmp.ne.s32.totalorder %s136_s12, %s222_s13  ;;  %p228_p4 = scmp.lt.s32.totalorder %s222_s13, %s222_s13 }
  0x2c   :  { %163 = vmatpush3.bf16.msra.mxu0 %v176_v2  ;;  %p229_p5 = por %p228_p4, %p227_p3 }
  0x2e   :  { %p230_p6 = pnand %p229_p5, %p223_p2 }
  0x2f   :  { %165 = vmatmul.mubr.msk.bf16.vlgmr.msra.gmra.mrb[0].mxu0 %vm74_vm1, %v177_v3 }
 0x102   :  { %v112_v5 = vpop.f32.mrb[0].mxu0 }
 0x103   :  { %v113_v6 = vadd.f32 %v148_v4, %v112_v5  ;;  %v166_v7 = vpop.f32.mrb[1].mxu0 }
 0x104   :  { %v115_v8 = vpop.f32.mrb[2].mxu0 }
 0x105   :  { %v155_v9 = vpack.c.bf16 %v113_v6, %v113_v6  ;;  %v116_v10 = vadd.f32 %v148_v4, %v115_v8  ;;  %v167_v11 = vpop.f32.mrb[3].mxu0 }
 0x107   :  { %v156_v12 = vpack.c.bf16 %v116_v10, %v116_v10  ;;  %128 = vst.msk [vmem:[#allocation7] sm:$0xf] %vm127_vm2, %v155_v9 }
 0x109   :  { %129 = vst.msk [vmem:[#allocation7 + $0x4] sm:$0xf] %vm127_vm2, %v156_v12 }
 0x10a   :  { %233 = shalt.err (!%p230_p6)
}
 0x10b   :  { %s234_s15 = scalar_lea.hbm %s328_s3, 128 }
 0x10c   :  { %p235_p7 = scmp.ne.s32.totalorder %s328_s3, %s234_s15  ;;  %p238_p8 = scmp.lt.u32.totalorder %s234_s15, %s328_s3 }
 0x10e   :  { %p240_p9 = pnand %p238_p8, %p235_p7 }
 0x110   :  { %243 = shalt.err (!%p240_p9)
}
 0x111   :  { %141 = dma.vmem_to_hbm [thread:$0]  %s136_s12, 128, %s328_s3, [#allocation4], %s251_s22, %s251_s22, %s252_s23  }
 0x112   :  { %248 = dma.done.wait [#allocation4], 128  }
 0x113   :  { %249 = vsyncadd [#allocation4], 4294967168 }
 0x114   :  { %145 = vsyncpa [#allocation3], 1 }
 0x115   :  { %146 = vsyncpa [#allocation6], 1 }
 0x116   :  { %147 = vsyncpa [#allocation4], 1 }

</bundles_post_ra>
